<compile_context>
chip_gen: v7x
topology: tpu7x:2x2x1
jax: 0.10.0
libtpu: 0.0.40
codegen_flags: <defaults>
</compile_context>

<pallas_src>
from functools import partial

import jax
import jax.numpy as jnp
from jax.experimental import pallas as pl
from jax.experimental.pallas import tpu as pltpu


def _ndnf_kernel(xT_ref, wc_aug_ref, wd_ref, bias_d_ref, outT_ref):
    """One batch-tile of the NeuralDNF forward, in transposed (lane-dense) layout.

    xT_ref     : (F+1, TB)  inputs^T, last row is the constant +1 (bf16)
    wc_aug_ref : (C,  F+1)  conjunction weights with bias_c folded as last column (f32)
    wd_ref     : (O,  C)    disjunction weights (f32)
    bias_d_ref : (O,  1)    delta * (sum|Wd|_row - max|Wd|_row)
    outT_ref   : (O,  TB)   raw disjunction logits, transposed
    """
    xT = xT_ref[...].astype(jnp.float32)                       # exact for +/-1 / +1 rows
    # Conjunction layer (+ folded bias): (C, F+1) x (F+1, TB) -> (C, TB)
    conj = jnp.dot(wc_aug_ref[...], xT, preferred_element_type=jnp.float32)
    tconj = jnp.tanh(conj)
    # Disjunction layer: (O, C) x (C, TB) -> (O, TB), + weight-only bias.
    disj = jnp.dot(wd_ref[...], tconj, preferred_element_type=jnp.float32)
    outT_ref[...] = (disj + bias_d_ref[...]).astype(outT_ref.dtype)


def _default_block_b(batch: int) -> int:
    """1 grid step on single-TC chips (v5e/v6e); 2 'parallel' steps on v7x (2 TCs)."""
    try:
        kind = jax.devices()[0].device_kind.lower()
    except Exception:  # pragma: no cover - defensive
        kind = ""
    n_tc = 2 if "v7" in kind else 1
    tb = -(-batch // n_tc)                     # ceil
    tb = max(128, ((tb + 127) // 128) * 128)   # lane-dim blocks must be 128-multiples
    return tb


@partial(jax.jit, static_argnums=(4,))
def _forward_jit(x, wc, wd, delta, block_b):
    B, F = x.shape
    C, F2 = wc.shape
    O, C2 = wd.shape
    assert F == F2 and C == C2

    wc = wc.astype(jnp.float32)
    wd = wd.astype(jnp.float32)

    # --- weight-only semi-symbolic biases (hoisted, fused into this jit) ---
    abs_wc = jnp.abs(wc)
    bias_c = delta * (jnp.max(abs_wc, axis=1) - jnp.sum(abs_wc, axis=1))   # (C,)
    abs_wd = jnp.abs(wd)
    bias_d = delta * (jnp.sum(abs_wd, axis=1) - jnp.max(abs_wd, axis=1))   # (O,)
    bias_d = bias_d.reshape(O, 1).astype(jnp.float32)

    # Fold bias_c into the conjunction matmul: extra column on Wc, extra +1 row on x^T.
    wc_aug = jnp.concatenate([wc, bias_c.reshape(C, 1)], axis=1)           # (C, F+1)

    # Transposed, bf16, batch-padded input with the constant +1 row appended.
    tb = block_b
    n_tiles = pl.cdiv(B, tb)
    B_pad = n_tiles * tb
    xT = x.T.astype(jnp.bfloat16)                                          # (F, B)
    if B_pad != B:
        xT = jnp.pad(xT, ((0, 0), (0, B_pad - B)))
    ones_row = jnp.ones((1, B_pad), dtype=jnp.bfloat16)
    x_aug = jnp.concatenate([xT, ones_row], axis=0)                        # (F+1, B_pad)

    outT = pl.pallas_call(
        _ndnf_kernel,
        out_shape=jax.ShapeDtypeStruct((O, B_pad), jnp.float32),
        grid=(n_tiles,),
        in_specs=[
            pl.BlockSpec((F + 1, tb), lambda i: (0, i)),   # x^T tile (batch on lanes)
            pl.BlockSpec((C, F + 1), lambda i: (0, 0)),    # Wc (bias folded), resident
            pl.BlockSpec((O, C), lambda i: (0, 0)),        # Wd, resident
            pl.BlockSpec((O, 1), lambda i: (0, 0)),        # disjunction bias
        ],
        out_specs=pl.BlockSpec((O, tb), lambda i: (0, i)),  # lane-dense output
        compiler_params=pltpu.CompilerParams(
            dimension_semantics=("parallel",)),             # shard batch across v7x TCs
    )(x_aug, wc_aug, wd, bias_d)

    return outT[:, :B].T                                     # (B, O)


def car_neural_dnf_forward(x, wc, wd, *, delta=1.0, block_b=None):
    """Pallas wrapper.

    x  : (B, F)   features (typically in {-1, +1})
    wc : (C, F)   conjunction-layer weights (PyTorch (out, in) layout)
    wd : (O, C)   disjunction-layer weights (PyTorch (out, in) layout)
    """
    if block_b is None:
        block_b = _default_block_b(x.shape[0])
    return _forward_jit(x, wc, wd, float(delta), int(block_b))


def car_neural_dnf_reference(x, wc, wd, *, delta=1.0):
    """Pure-JAX reference for correctness checking."""
    abs_wc = jnp.abs(wc)
    bias_c = jnp.max(abs_wc, axis=1) - jnp.sum(abs_wc, axis=1)
    conj = x @ wc.T + delta * bias_c[None, :]
    tconj = jnp.tanh(conj)
    abs_wd = jnp.abs(wd)
    bias_d = jnp.sum(abs_wd, axis=1) - jnp.max(abs_wd, axis=1)
    return tconj @ wd.T + delta * bias_d[None, :]


if __name__ == "__main__":
    # Car dataset: 21 one-hot features (4+4+4+3+3+3), 4 classes.
    batch = 512
    num_features = 21
    num_conjunctions = 32
    num_classes = 4
    delta = 1.0

    key = jax.random.PRNGKey(0)
    kx, kc, kd = jax.random.split(key, 3)

    # Deterministic synthetic parameters (no checkpoint load).
    wc = jax.random.uniform(kc, (num_conjunctions, num_features),
                            jnp.float32, minval=-6.0, maxval=6.0)
    wd = jax.random.uniform(kd, (num_classes, num_conjunctions),
                            jnp.float32, minval=-6.0, maxval=6.0)

    # Inputs in {-1, +1}, the usual encoding for neural-DNF models (exact in bf16).
    x = jnp.where(
        jax.random.bernoulli(kx, 0.5, (batch, num_features)), 1.0, -1.0
    ).astype(jnp.float32)

    out = car_neural_dnf_forward(x, wc, wd, delta=delta)
    out = jax.block_until_ready(out)

    ref = car_neural_dnf_reference(x, wc, wd, delta=delta)
    assert out.shape == (batch, num_classes)
    assert jnp.allclose(out, ref, atol=1e-3, rtol=1e-3), (out, ref)

    # TODO(synk): get_weight_reg_loss (|p*(6-|p|)|.mean()) is a training-time
    # regularizer over the parameters only, not part of the forward pass; it
    # stays in plain JAX if needed.

    print("KERNEL_OK")
</pallas_src>

<mosaic_0001>
module attributes {stable_mosaic.version = 11 : i64} {
  func.func @_ndnf_kernel(%arg0: i32, %arg1: memref<22x512xbf16, #tpu.memory_space<vmem>>, %arg2: memref<32x22xf32, #tpu.memory_space<vmem>>, %arg3: memref<4x32xf32, #tpu.memory_space<vmem>>, %arg4: memref<4x1xf32, #tpu.memory_space<vmem>>, %arg5: memref<4x512xf32, #tpu.memory_space<vmem>>) attributes {dimension_semantics = [#tpu.dimension_semantics<parallel>], iteration_bounds = array<i64: 1>, scalar_prefetch = 0 : i64, scratch_operands = 0 : i64, tpu.core_type = #tpu.core_type<tc>, window_params = [{transform_indices = @transform_0, window_bounds = array<i64: 22, 512>}, {pipeline_mode = #tpu.pipeline_mode<synchronous>, transform_indices = @transform_1, window_bounds = array<i64: 32, 22>}, {pipeline_mode = #tpu.pipeline_mode<synchronous>, transform_indices = @transform_2, window_bounds = array<i64: 4, 32>}, {pipeline_mode = #tpu.pipeline_mode<synchronous>, transform_indices = @transform_3, window_bounds = array<i64: 4, 1>}, {transform_indices = @transform_4, window_bounds = array<i64: 4, 512>}]} {
    %c0 = arith.constant 0 : index
    %c0_0 = arith.constant 0 : index
    %0 = vector.load %arg1[%c0, %c0_0] : memref<22x512xbf16, #tpu.memory_space<vmem>>, vector<22x512xbf16>
    %1 = arith.extf %0 : vector<22x512xbf16> to vector<22x512xf32>
    %c0_1 = arith.constant 0 : index
    %c0_2 = arith.constant 0 : index
    %2 = vector.load %arg2[%c0_1, %c0_2] : memref<32x22xf32, #tpu.memory_space<vmem>>, vector<32x22xf32>
    %cst = arith.constant dense<0.000000e+00> : vector<32x512xf32>
    %3 = tpu.matmul %2, %1, %cst {dimension_numbers = #tpu.dot_dimension_numbers<[1], [0], [0], [1], [0, 0, 1, 1], [], []>} : vector<32x22xf32>, vector<22x512xf32>, vector<32x512xf32> -> vector<32x512xf32>
    %4 = math.tanh %3 : vector<32x512xf32>
    %c0_3 = arith.constant 0 : index
    %c0_4 = arith.constant 0 : index
    %5 = vector.load %arg3[%c0_3, %c0_4] : memref<4x32xf32, #tpu.memory_space<vmem>>, vector<4x32xf32>
    %cst_5 = arith.constant dense<0.000000e+00> : vector<4x512xf32>
    %6 = tpu.matmul %5, %4, %cst_5 {dimension_numbers = #tpu.dot_dimension_numbers<[1], [0], [0], [1], [0, 0, 1, 1], [], []>} : vector<4x32xf32>, vector<32x512xf32>, vector<4x512xf32> -> vector<4x512xf32>
    %c0_6 = arith.constant 0 : index
    %c0_7 = arith.constant 0 : index
    %7 = vector.load %arg4[%c0_6, %c0_7] : memref<4x1xf32, #tpu.memory_space<vmem>>, vector<4x1xf32>
    %8 = vector.broadcast %7 : vector<4x1xf32> to vector<4x512xf32>
    %9 = arith.addf %6, %8 : vector<4x512xf32>
    %c0_8 = arith.constant 0 : index
    %c0_9 = arith.constant 0 : index
    %10 = vector.load %arg5[%c0_8, %c0_9] : memref<4x512xf32, #tpu.memory_space<vmem>>, vector<4x512xf32>
    tpu.vector_store %arg5[%c0_8, %c0_9], %9 {strides = array<i32>} : memref<4x512xf32, #tpu.memory_space<vmem>>, vector<4x512xf32>,
    return
  }
  func.func @transform_0(%arg0: i32) -> (i32, i32) {
    %c0_i32 = arith.constant 0 : i32
    %c0_i32_0 = arith.constant 0 : i32
    return %c0_i32, %arg0 : i32, i32
  }
  func.func @transform_1(%arg0: i32) -> (i32, i32) {
    %c0_i32 = arith.constant 0 : i32
    %c0_i32_0 = arith.constant 0 : i32
    %c0_i32_1 = arith.constant 0 : i32
    return %c0_i32, %c0_i32_0 : i32, i32
  }
  func.func @transform_2(%arg0: i32) -> (i32, i32) {
    %c0_i32 = arith.constant 0 : i32
    %c0_i32_0 = arith.constant 0 : i32
    %c0_i32_1 = arith.constant 0 : i32
    return %c0_i32, %c0_i32_0 : i32, i32
  }
  func.func @transform_3(%arg0: i32) -> (i32, i32) {
    %c0_i32 = arith.constant 0 : i32
    %c0_i32_0 = arith.constant 0 : i32
    %c0_i32_1 = arith.constant 0 : i32
    return %c0_i32, %c0_i32_0 : i32, i32
  }
  func.func @transform_4(%arg0: i32) -> (i32, i32) {
    %c0_i32 = arith.constant 0 : i32
    %c0_i32_0 = arith.constant 0 : i32
    return %c0_i32, %arg0 : i32, i32
  }
}

</mosaic_0001>

<bundles_post_ra>
// kernel: _forward_jit.1
= control target key start
LH: loop header
LB: loop body
LE: loop exit
PB: predicated region body
PF: predicated region fallthrough
CT: control target
= control target key end

     0   :  { %vm53_vm0 = vcmask 1045504   ;;  %v545_v2 = vmov 0.0   ;;  %s633_s0 = inlined_call_operand.vmem [shape: bf16[22,512], index: 0, kind: input, shape index: {}]   ;;  %s634_s1 = inlined_call_operand.vmem [shape: f32[32,22], index: 1, kind: input, shape index: {}]   ;;  %s635_s2 = inlined_call_operand.vmem [shape: f32[4,32], index: 2, kind: input, shape index: {}]   ;;  %s636_s3 = inlined_call_operand.vmem [shape: f32[4,1], index: 3, kind: input, shape index: {}]   ;;  %s637_s4 = inlined_call_operand.hbm [shape: f32[4,512], index: 4, kind: output, shape index: {}]  }
   0x1   :  { %v483_v0 = vld [vmem:[%s633_s0 + $0x4] ss:$16 sps:$4 sm:$0xff]   ;;  %v485_v1 = vld [vmem:[%s633_s0 + $0xc] ss:$16 sps:$4 sm:$0xff]   ;;  %130 = vmatprep.mubr.f32.mxu0 %v545_v2  ;;  %219 = vmatprep.mubr.f32.mxu1 %v545_v2  ;;  %v487_v3 = vld [vmem:[%s633_s0] ss:$16 sps:$4 sm:$0xff]  }
   0x2   :  { %452 = vmatprep.subr.bf16.mxu0 %v483_v0  ;;  %v488_v4 = vld [vmem:[%s633_s0 + $0x8] ss:$16 sps:$4 sm:$0xff]   ;;  %v22_v5 = vld [vmem:[%s633_s0 + $0x20] sm:$0x77]  ;;  %456 = vmatprep.subr.bf16.mxu1 %v485_v1 }
   0x3   :  { %v33_v6 = vunpack.c.h.bf16 %v22_v5  ;;  %v23_v7 = vld [vmem:[%s633_s0 + $0x28] sm:$0x77]  ;;  %454 = vmatpush1.bf16.msra.mxu0 %v487_v3  ;;  %458 = vmatpush1.bf16.msra.mxu1 %v488_v4  ;;  %v32_v9 = vunpack.c.l.bf16 %v22_v5 }
   0x4   :  { %v35_v8 = vunpack.c.h.bf16 %v23_v7  ;;  %v34_v10 = vunpack.c.l.bf16 %v23_v7 }
   0x5   :  { %9 = vsyncpa [#allocation3], 0  ;;  %437 = vmatprep.subr.msk.mxu0 %vm53_vm0, %v33_v6  ;;  %v36_v11 = vld [vmem:[%s634_s1] sm:$0xff]  ;;  %vm40_vm1 = vcmask 179200   ;;  %v37_v12 = vld [vmem:[%s634_s1 + $0x8] sm:$0xff]  ;;  %v546_v16 = vmov 0  }
   0x6   :  { %443 = vmatprep.subr.msk.mxu1 %vm53_vm0, %v35_v8  ;;  %v38_v13 = vld [vmem:[%s634_s1 + $0x10] sm:$0xff]  ;;  %v39_v14 = vld [vmem:[%s634_s1 + $0x18] sm:$0xff]  ;;  %v261_v15 = vld [vmem:[%s636_s3] sm:$0xf]  ;;  %482 = vset.pattern.permute.xlu0 %v546_v16  ;;  %vm267_vm2 = vcmask 261120   ;;  %s547_s10 = smov [#allocation2]  }
   0x7   :  { %438 = vmatpush1.msk.msra.mxu0 %vm53_vm0, %v32_v9  ;;  %444 = vmatpush1.msk.msra.mxu1 %vm53_vm0, %v34_v10  ;;  %v260_v57 = vld [vmem:[%s635_s2] sm:$0xf]  ;;  %s429_s11 = sshll.u32 %s547_s10, 4  ;;  %s430_s11 = int_to_ptr.vmem [resolvable:$true] %s429_s11 }
   0x8   :  { %439 = vmatmul.mubr.msk.f32.vlgmr.msra.gmra.mrb[0].mxu0 %vm40_vm1, %v36_v11  ;;  %445 = vmatmul.mubr.msk.f32.vlgmr.msra.gmra.mrb[0].mxu1 %vm40_vm1, %v36_v11  ;;  %s521_s2 = scalar_lea.vmem %s430_s11, 256  ;;  %p526_p1 = scmp.lt.s32.totalorder %s430_s11, %s430_s11 }
   0x9   :  { %136 = vmatprep.mubr.f32.mxu0 %v545_v2  ;;  %225 = vmatprep.mubr.f32.mxu1 %v545_v2  ;;  %p522_p0 = scmp.ne.s32.totalorder %s430_s11, %s521_s2  ;;  %p527_p2 = scmp.lt.s32.totalorder %s521_s2, %s521_s2 }
   0xa   :  { %264 = vperm.xlu0 %482, %v261_v15  }
   0xb   :  { %p528_p3 = por %p527_p2, %p526_p1 }
   0xc   :  { %440 = vmatmul.mubr.msk.f32.gmra.mrb[2].mxu0 %vm40_vm1, %v37_v12  ;;  %446 = vmatmul.mubr.msk.f32.gmra.mrb[2].mxu1 %vm40_vm1, %v37_v12 }
   0xd   :  { %142 = vmatprep.mubr.f32.mxu0 %v545_v2  ;;  %231 = vmatprep.mubr.f32.mxu1 %v545_v2  ;;  %p529_p4 = pnand %p528_p3, %p522_p0 }
  0x10   :  { %441 = vmatmul.mubr.msk.f32.gmra.mrb[4].mxu0 %vm40_vm1, %v38_v13  ;;  %447 = vmatmul.mubr.msk.f32.gmra.mrb[4].mxu1 %vm40_vm1, %v38_v13 }
  0x11   :  { %148 = vmatprep.mubr.f32.mxu0 %v545_v2  ;;  %237 = vmatprep.mubr.f32.mxu1 %v545_v2 }
  0x14   :  { %442 = vmatmul.mubr.msk.f32.gmra.mrb[6].mxu0 %vm40_vm1, %v39_v14  ;;  %448 = vmatmul.mubr.msk.f32.gmra.mrb[6].mxu1 %vm40_vm1, %v39_v14 }
  0x15   :  { %335 = vmatprep.mubr.f32.mxu0 %v545_v2  ;;  %406 = vmatprep.mubr.f32.mxu1 %v545_v2 }
  0x89   :  { %v265_v58 = vpop.permute.xlu0 %264 }
  0xdb   :  { %v132_v17 = vpop.f32.mrb[0].mxu0  ;;  %v221_v18 = vpop.f32.mrb[0].mxu1 }
  0xdc   :  { %489 = vtanh.f32 %v132_v17  ;;  %v134_v19 = vpop.f32.mrb[1].mxu0  ;;  %v223_v20 = vpop.f32.mrb[1].mxu1 }
  0xdd   :  { %491 = vtanh.f32 %v221_v18 }
  0xde   :  { %493 = vtanh.f32 %v134_v19 }
  0xdf   :  { %495 = vtanh.f32 %v223_v20  ;;  %v138_v21 = vpop.f32.mrb[2].mxu0  ;;  %v227_v22 = vpop.f32.mrb[2].mxu1 }
  0xe0   :  { %497 = vtanh.f32 %v138_v21  ;;  %v140_v23 = vpop.f32.mrb[3].mxu0  ;;  %v229_v24 = vpop.f32.mrb[3].mxu1 }
  0xe1   :  { %499 = vtanh.f32 %v227_v22 }
  0xe2   :  { %501 = vtanh.f32 %v140_v23 }
  0xe3   :  { %503 = vtanh.f32 %v229_v24  ;;  %v144_v25 = vpop.f32.mrb[4].mxu0  ;;  %v233_v26 = vpop.f32.mrb[4].mxu1 }
  0xe4   :  { %505 = vtanh.f32 %v144_v25  ;;  %v146_v27 = vpop.f32.mrb[5].mxu0  ;;  %v235_v28 = vpop.f32.mrb[5].mxu1 }
  0xe5   :  { %507 = vtanh.f32 %v233_v26 }
  0xe6   :  { %v490_v29 = vpop.eup %489  ;;  %509 = vtanh.f32 %v146_v27 }
  0xe7   :  { %v492_v30 = vpop.eup %491  ;;  %511 = vtanh.f32 %v235_v28  ;;  %v150_v31 = vpop.f32.mrb[6].mxu0 }
  0xe8   :  { %v239_v32 = vpop.f32.mrb[6].mxu1  ;;  %v494_v33 = vpop.eup %493  ;;  %513 = vtanh.f32 %v150_v31 }
  0xe9   :  { %v152_v34 = vpop.f32.mrb[7].mxu0  ;;  %v241_v35 = vpop.f32.mrb[7].mxu1  ;;  %515 = vtanh.f32 %v239_v32 }
  0xea   :  { %v496_v36 = vpop.eup %495  ;;  %517 = vtanh.f32 %v152_v34 }
  0xeb   :  { %v498_v37 = vpop.eup %497  ;;  %519 = vtanh.f32 %v241_v35 }
  0xec   :  { %v500_v38 = vpop.eup %499  ;;  %v461_v39 = vpack.c.bf16 %v498_v37, %v490_v29 }
  0xed   :  { %v502_v40 = vpop.eup %501  ;;  %v469_v41 = vpack.c.bf16 %v500_v38, %v492_v30 }
  0xee   :  { %v504_v42 = vpop.eup %503  ;;  %v459_v43 = vpack.c.bf16 %v502_v40, %v494_v33 }
  0xef   :  { %v506_v44 = vpop.eup %505  ;;  %v467_v45 = vpack.c.bf16 %v504_v42, %v496_v36 }
  0xf0   :  { %v508_v46 = vpop.eup %507  ;;  %460 = vmatprep.subr.bf16.mxu0 %v459_v43 }
  0xf1   :  { %v510_v47 = vpop.eup %509  ;;  %468 = vmatprep.subr.bf16.mxu1 %v467_v45  ;;  %462 = vmatpush1.bf16.msra.mxu0 %v461_v39 }
  0xf2   :  { %v512_v48 = vpop.eup %511  ;;  %470 = vmatpush1.bf16.msra.mxu1 %v469_v41 }
  0xf3   :  { %v514_v49 = vpop.eup %513 }
  0xf4   :  { %v516_v50 = vpop.eup %515  ;;  %v465_v51 = vpack.c.bf16 %v514_v49, %v506_v44 }
  0xf5   :  { %v518_v52 = vpop.eup %517  ;;  %v473_v53 = vpack.c.bf16 %v516_v50, %v508_v46 }
  0xf6   :  { %v520_v54 = vpop.eup %519  ;;  %v463_v55 = vpack.c.bf16 %v518_v52, %v510_v47 }
  0xf7   :  { %v471_v56 = vpack.c.bf16 %v520_v54, %v512_v48 }
  0xf8   :  { %464 = vmatprep.subr.bf16.mxu0 %v463_v55 }
  0xf9   :  { %472 = vmatprep.subr.bf16.mxu1 %v471_v56  ;;  %466 = vmatpush1.bf16.msra.mxu0 %v465_v51 }
  0xfa   :  { %474 = vmatpush1.bf16.msra.mxu1 %v473_v53 }
  0xfc   :  { %449 = vmatmul.mubr.msk.f32.vlgmr.msra.gmra.mrb[8].mxu0 %vm267_vm2, %v260_v57 }
  0xfd   :  { %450 = vmatmul.mubr.msk.f32.vlgmr.msra.gmra.mrb[8].mxu1 %vm267_vm2, %v260_v57 }
 0x1cf   :  { %v337_v59 = vpop.f32.mrb[8].mxu0 }
 0x1d0   :  { %v408_v60 = vpop.f32.mrb[8].mxu1  ;;  %v338_v61 = vadd.f32 %v337_v59, %v265_v58  ;;  %v339_v62 = vpop.f32.mrb[9].mxu0 }
 0x1d1   :  { %v409_v63 = vadd.f32 %v408_v60, %v265_v58  ;;  %v340_v0 = vadd.f32 %v339_v62, %v265_v58  ;;  %v410_v1 = vpop.f32.mrb[9].mxu1 }
 0x1d2   :  { %v411_v2 = vadd.f32 %v410_v1, %v265_v58 }
 0x1d3   :  { %v417_v3 = vcombine.low %v338_v61, %v340_v0 }
 0x1d4   :  { %v418_v4 = vcombine.low %v409_v63, %v411_v2 }
 0x1d5   :  { %421 = vst [vmem:[#allocation2] sm:$0xff] %v417_v3 }
 0x1d6   :  { %422 = vst [vmem:[#allocation2 + $0x8] sm:$0xff] %v418_v4 }
 0x1d7   :  { %532 = shalt.err (!%p529_p4)
}
 0x1d8   :  { %s533_s14 = scalar_lea.hbm %s637_s4, 256 }
 0x1d9   :  { %p534_p5 = scmp.ne.s32.totalorder %s637_s4, %s533_s14  ;;  %p537_p6 = scmp.lt.u32.totalorder %s533_s14, %s637_s4 }
 0x1db   :  { %p539_p7 = pnand %p537_p6, %p534_p5 }
 0x1dd   :  { %542 = shalt.err (!%p539_p7)
}
 0x1de   :  { %432 = dma.vmem_to_hbm [thread:$0]  %s430_s11, 256, %s637_s4, [#allocation3]  }
 0x1df   :  { %543 = dma.done.wait [#allocation3], 256  }
 0x1e0   :  { %544 = vsyncadd [#allocation3], 4294967040 }
 0x1e1   :  { %436 = vsyncpa [#allocation3], 1 }

</bundles_post_ra>
